<compile_context>
chip_gen: v5e
topology: v5e:2x2
jax: 0.10.0
libtpu: 0.0.40
codegen_flags: <defaults>
</compile_context>

<pallas_src>
import functools
import math

import jax
import jax.numpy as jnp
from jax.experimental import pallas as pl
from jax.experimental.pallas import tpu as pltpu


def _triplet_hard_kernel(emb_a_ref, emb_c_ref, lab_a_ref, lab_c_ref,
                         out_ref, ap2_ref, an2_ref, *, margin, n_valid, block_n):
    j = pl.program_id(1)

    @pl.when(j == 0)
    def _init():
        ap2_ref[...] = jnp.full_like(ap2_ref, -jnp.inf)
        an2_ref[...] = jnp.full_like(an2_ref, jnp.inf)

    a = emb_a_ref[...]                                   # (TM, D) native dtype
    c = emb_c_ref[...]                                   # (TN, D) native dtype

    # -2 * (A @ C^T): scale folded into the (TM, D) operand (exact for floats),
    # transpose expressed as the contraction dimension (no materialized C^T).
    a_m2 = a * jnp.asarray(-2.0, dtype=a.dtype)
    gram_m2 = jax.lax.dot_general(
        a_m2, c, (((1,), (1,)), ((), ())),
        preferred_element_type=jnp.float32)              # (TM, TN) f32

    c32 = c.astype(jnp.float32)
    sq_c = jnp.transpose(jnp.sum(c32 * c32, axis=1, keepdims=True))  # (1, TN)

    # Partial squared distance; anchor norm (constant along j) is added at
    # finalize and does not change the arg-min / arg-max.
    part = gram_m2 + sq_c                                # (TM, TN)

    same = lab_a_ref[...] == lab_c_ref[...]              # (TM,1)==(1,TN) -> (TM,TN)
    cand_idx = j * block_n + jax.lax.broadcasted_iota(jnp.int32, (1, block_n), 1)
    valid = cand_idx < n_valid                           # masks batch padding
    pos = jnp.logical_and(same, valid)
    neg = jnp.logical_and(jnp.logical_not(same), valid)

    ap2_ref[...] = jnp.maximum(
        ap2_ref[...],
        jnp.max(jnp.where(pos, part, jnp.float32(-jnp.inf)), axis=1, keepdims=True))
    an2_ref[...] = jnp.minimum(
        an2_ref[...],
        jnp.min(jnp.where(neg, part, jnp.float32(jnp.inf)), axis=1, keepdims=True))

    @pl.when(j == pl.num_programs(1) - 1)
    def _finalize():
        a32 = a.astype(jnp.float32)
        sq_a = jnp.sum(a32 * a32, axis=1, keepdims=True)           # (TM, 1)
        eps = jnp.float32(1e-12)
        ap = jnp.sqrt(jnp.maximum(ap2_ref[...] + sq_a, eps))        # 2*TM sqrts
        an = jnp.sqrt(jnp.maximum(an2_ref[...] + sq_a, eps))
        out_ref[...] = jnp.maximum(ap - an + jnp.float32(margin), 0.0)


def _round_up(x, m):
    return (x + m - 1) // m * m


def triplet_margin_loss_hard(embeddings, labels, margin,
                             *, block_m=256, block_n=256):
    """embeddings: (B, D) float (any float dtype); labels: (B,) int. Scalar f32 loss."""
    B, D = embeddings.shape

    if B <= max(block_m, block_n):
        b_pad = _round_up(B, 8)
        tm = tn = b_pad                      # single tile; block == full dims
    else:
        assert block_m % 8 == 0 and block_n % 128 == 0, (
            "block_m must be a multiple of 8, block_n a multiple of 128")
        tm, tn = block_m, block_n
        b_pad = _round_up(B, math.lcm(tm, tn))

    emb = embeddings                          # keep native dtype (bf16 stays bf16)
    lab = labels.astype(jnp.int32)
    if b_pad != B:
        emb = jnp.pad(emb, ((0, b_pad - B), (0, 0)))
        lab = jnp.pad(lab, (0, b_pad - B))    # padded rows masked inside the kernel
    lab_col = lab.reshape(b_pad, 1)
    lab_row = lab.reshape(1, b_pad)

    grid = (b_pad // tm, b_pad // tn)
    kernel = functools.partial(_triplet_hard_kernel, margin=float(margin),
                               n_valid=B, block_n=tn)

    # VMEM budget: double-buffered embedding tiles + (TM,TN) gram + scratch.
    itemsize = jnp.dtype(emb.dtype).itemsize
    vmem_est = (2 * (tm + tn) * D * itemsize + 4 * tm * tn
                + 16 * tm + 2 * (tm + tn) * 4)
    vmem_limit = int(min(64 * 1024 * 1024, max(2 * vmem_est, 32 * 1024 * 1024)))

    per_anchor = pl.pallas_call(
        kernel,
        out_shape=jax.ShapeDtypeStruct((b_pad, 1), jnp.float32),
        grid=grid,
        in_specs=[
            pl.BlockSpec((tm, D), lambda i, j: (i, 0)),   # anchor rows
            pl.BlockSpec((tn, D), lambda i, j: (j, 0)),   # candidate rows
            pl.BlockSpec((tm, 1), lambda i, j: (i, 0)),   # anchor labels (column)
            pl.BlockSpec((1, tn), lambda i, j: (0, j)),   # candidate labels (row)
        ],
        out_specs=pl.BlockSpec((tm, 1), lambda i, j: (i, 0)),
        scratch_shapes=[
            pltpu.VMEM((tm, 1), jnp.float32),   # running max of masked d2 (positives)
            pltpu.VMEM((tm, 1), jnp.float32),   # running min of masked d2 (negatives)
        ],
        compiler_params=pltpu.CompilerParams(
            dimension_semantics=("parallel", "arbitrary"),
            vmem_limit_bytes=vmem_limit),
    )(emb, emb, lab_col, lab_row)

    return jnp.mean(per_anchor[:B, 0])


def _reference(embeddings, labels, margin):
    # Pure-JAX reference mirroring the PyTorch code.
    e = embeddings.astype(jnp.float32)
    sq = jnp.sum(e * e, axis=1, keepdims=True)
    d2 = sq + sq.T - 2.0 * (e @ e.T)
    d = jnp.sqrt(jnp.clip(d2, 1e-12))
    mask = labels[:, None] == labels[None, :]
    ap = jnp.max(jnp.where(mask, d, -jnp.inf), axis=1)
    an = jnp.min(jnp.where(mask, jnp.inf, d), axis=1)
    return jnp.mean(jnp.maximum(ap - an + margin, 0.0))


if __name__ == "__main__":
    key = jax.random.PRNGKey(0)
    margin = 0.3
    k0, k1 = jax.random.split(key)

    # Small case (single tile, no padding).
    B, D = 8, 32
    embeddings = jax.random.normal(k0, (B, D), dtype=jnp.float32)
    labels = jnp.array([0, 0, 1, 1, 2, 2, 3, 3], dtype=jnp.int32)
    loss = jax.block_until_ready(triplet_margin_loss_hard(embeddings, labels, margin))
    ref = jax.block_until_ready(_reference(embeddings, labels, margin))
    assert jnp.allclose(loss, ref, atol=1e-5, rtol=1e-5), (loss, ref)

    # Larger, non-multiple batch exercising tiling + padding + running min/max.
    B2, D2 = 300, 64
    emb2 = jax.random.normal(k1, (B2, D2), dtype=jnp.float32)
    lab2 = (jnp.arange(B2) % 5).astype(jnp.int32)
    loss2 = jax.block_until_ready(
        triplet_margin_loss_hard(emb2, lab2, margin, block_m=128, block_n=128))
    ref2 = jax.block_until_ready(_reference(emb2, lab2, margin))
    assert jnp.allclose(loss2, ref2, atol=1e-4, rtol=1e-4), (loss2, ref2)

    print("KERNEL_OK")
</pallas_src>

<mosaic_0001>
module attributes {stable_mosaic.version = 11 : i64} {
  func.func @_triplet_hard_kernel(%arg0: i32, %arg1: i32, %arg2: memref<8x32xf32, #tpu.memory_space<vmem>>, %arg3: memref<8x32xf32, #tpu.memory_space<vmem>>, %arg4: memref<8x1xi32, #tpu.memory_space<vmem>>, %arg5: memref<1x8xi32, #tpu.memory_space<vmem>>, %arg6: memref<8x1xf32, #tpu.memory_space<vmem>>, %arg7: memref<8x1xf32, #tpu.memory_space<vmem>>, %arg8: memref<8x1xf32, #tpu.memory_space<vmem>>) attributes {dimension_semantics = [#tpu.dimension_semantics<parallel>, #tpu.dimension_semantics<arbitrary>], iteration_bounds = array<i64: 1, 1>, scalar_prefetch = 0 : i64, scratch_operands = 2 : i64, tpu.core_type = #tpu.core_type<tc>, window_params = [{transform_indices = @transform_0, window_bounds = array<i64: 8, 32>}, {transform_indices = @transform_1, window_bounds = array<i64: 8, 32>}, {transform_indices = @transform_2, window_bounds = array<i64: 8, 1>}, {transform_indices = @transform_3, window_bounds = array<i64: 1, 8>}, {transform_indices = @transform_4, window_bounds = array<i64: 8, 1>}]} {
    %c0_i32 = arith.constant 0 : i32
    %0 = arith.cmpi eq, %arg1, %c0_i32 : i32
    %1 = arith.extui %0 : i1 to i32
    %c0_i32_0 = arith.constant 0 : i32
    %2 = arith.cmpi ne, %1, %c0_i32_0 : i32
    scf.if %2 {
      %cst_26 = arith.constant 0xFF800000 : f32
      %47 = vector.broadcast %cst_26 : f32 to vector<8x1xf32>
      %c0_27 = arith.constant 0 : index
      %c0_28 = arith.constant 0 : index
      %48 = vector.load %arg7[%c0_27, %c0_28] : memref<8x1xf32, #tpu.memory_space<vmem>>, vector<8x1xf32>
      tpu.vector_store %arg7[%c0_27, %c0_28], %47 {strides = array<i32>} : memref<8x1xf32, #tpu.memory_space<vmem>>, vector<8x1xf32>,
      %cst_29 = arith.constant 0x7F800000 : f32
      %49 = vector.broadcast %cst_29 : f32 to vector<8x1xf32>
      %c0_30 = arith.constant 0 : index
      %c0_31 = arith.constant 0 : index
      %50 = vector.load %arg8[%c0_30, %c0_31] : memref<8x1xf32, #tpu.memory_space<vmem>>, vector<8x1xf32>
      tpu.vector_store %arg8[%c0_30, %c0_31], %49 {strides = array<i32>} : memref<8x1xf32, #tpu.memory_space<vmem>>, vector<8x1xf32>,
    } else {
    }
    %c0 = arith.constant 0 : index
    %c0_1 = arith.constant 0 : index
    %3 = vector.load %arg2[%c0, %c0_1] : memref<8x32xf32, #tpu.memory_space<vmem>>, vector<8x32xf32>
    %c0_2 = arith.constant 0 : index
    %c0_3 = arith.constant 0 : index
    %4 = vector.load %arg3[%c0_2, %c0_3] : memref<8x32xf32, #tpu.memory_space<vmem>>, vector<8x32xf32>
    %cst = arith.constant -2.000000e+00 : f32
    %5 = vector.broadcast %cst : f32 to vector<8x32xf32>
    %6 = arith.mulf %3, %5 : vector<8x32xf32>
    %cst_4 = arith.constant dense<0.000000e+00> : vector<8x8xf32>
    %7 = tpu.matmul %6, %4, %cst_4 {dimension_numbers = #tpu.dot_dimension_numbers<[1], [1], [0], [0], [0, 0, 1, 0], [], []>} : vector<8x32xf32>, vector<8x32xf32>, vector<8x8xf32> -> vector<8x8xf32>
    %8 = arith.mulf %4, %4 : vector<8x32xf32>
    %cst_5 = arith.constant dense<0.000000e+00> : vector<8xf32>
    %9 = vector.multi_reduction <add>, %8, %cst_5 [1] : vector<8x32xf32> to vector<8xf32>
    %10 = vector.shape_cast %9 : vector<8xf32> to vector<8x1xf32>
    %11 = tpu.transpose %10, [1, 0] : vector<8x1xf32> -> vector<1x8xf32>
    %12 = vector.broadcast %11 : vector<1x8xf32> to vector<8x8xf32>
    %13 = arith.addf %7, %12 : vector<8x8xf32>
    %c0_6 = arith.constant 0 : index
    %c0_7 = arith.constant 0 : index
    %14 = vector.load %arg4[%c0_6, %c0_7] : memref<8x1xi32, #tpu.memory_space<vmem>>, vector<8x1xi32>
    %c0_8 = arith.constant 0 : index
    %c0_9 = arith.constant 0 : index
    %15 = vector.load %arg5[%c0_8, %c0_9] : memref<1x8xi32, #tpu.memory_space<vmem>>, vector<1x8xi32>
    %16 = vector.broadcast %14 : vector<8x1xi32> to vector<8x8xi32>
    %17 = vector.broadcast %15 : vector<1x8xi32> to vector<8x8xi32>
    %18 = arith.cmpi eq, %16, %17 : vector<8x8xi32>
    %c8_i32 = arith.constant 8 : i32
    %19 = arith.muli %arg1, %c8_i32 : i32
    %20 = tpu.iota {dimensions = array<i32: 1>} : vector<1x8xi32>
    %21 = vector.broadcast %19 : i32 to vector<1x8xi32>
    %22 = arith.addi %21, %20 : vector<1x8xi32>
    %c8_i32_10 = arith.constant 8 : i32
    %23 = vector.broadcast %c8_i32_10 : i32 to vector<1x8xi32>
    %24 = arith.cmpi slt, %22, %23 : vector<1x8xi32>
    %25 = vector.broadcast %24 : vector<1x8xi1> to vector<8x8xi1>
    %26 = arith.andi %18, %25 : vector<8x8xi1>
    %cst_11 = arith.constant dense<true> : vector<8x8xi1>
    %27 = arith.xori %18, %cst_11 : vector<8x8xi1>
    %28 = vector.broadcast %24 : vector<1x8xi1> to vector<8x8xi1>
    %29 = arith.andi %27, %28 : vector<8x8xi1>
    %c0_12 = arith.constant 0 : index
    %c0_13 = arith.constant 0 : index
    %30 = vector.load %arg7[%c0_12, %c0_13] : memref<8x1xf32, #tpu.memory_space<vmem>>, vector<8x1xf32>
    %cst_14 = arith.constant 0xFF800000 : f32
    %31 = vector.broadcast %cst_14 : f32 to vector<8x8xf32>
    %32 = arith.select %26, %13, %31 : vector<8x8xi1>, vector<8x8xf32>
    %cst_15 = arith.constant dense<0xFF800000> : vector<8xf32>
    %33 = vector.multi_reduction <maximumf>, %32, %cst_15 [1] : vector<8x8xf32> to vector<8xf32>
    %34 = vector.shape_cast %33 : vector<8xf32> to vector<8x1xf32>
    %35 = arith.maximumf %30, %34 : vector<8x1xf32>
    %c0_16 = arith.constant 0 : index
    %c0_17 = arith.constant 0 : index
    %36 = vector.load %arg7[%c0_16, %c0_17] : memref<8x1xf32, #tpu.memory_space<vmem>>, vector<8x1xf32>
    tpu.vector_store %arg7[%c0_16, %c0_17], %35 {strides = array<i32>} : memref<8x1xf32, #tpu.memory_space<vmem>>, vector<8x1xf32>,
    %c0_18 = arith.constant 0 : index
    %c0_19 = arith.constant 0 : index
    %37 = vector.load %arg8[%c0_18, %c0_19] : memref<8x1xf32, #tpu.memory_space<vmem>>, vector<8x1xf32>
    %cst_20 = arith.constant 0x7F800000 : f32
    %38 = vector.broadcast %cst_20 : f32 to vector<8x8xf32>
    %39 = arith.select %29, %13, %38 : vector<8x8xi1>, vector<8x8xf32>
    %cst_21 = arith.constant dense<0x7F800000> : vector<8xf32>
    %40 = vector.multi_reduction <minimumf>, %39, %cst_21 [1] : vector<8x8xf32> to vector<8xf32>
    %41 = vector.shape_cast %40 : vector<8xf32> to vector<8x1xf32>
    %42 = arith.minimumf %37, %41 : vector<8x1xf32>
    %c0_22 = arith.constant 0 : index
    %c0_23 = arith.constant 0 : index
    %43 = vector.load %arg8[%c0_22, %c0_23] : memref<8x1xf32, #tpu.memory_space<vmem>>, vector<8x1xf32>
    tpu.vector_store %arg8[%c0_22, %c0_23], %42 {strides = array<i32>} : memref<8x1xf32, #tpu.memory_space<vmem>>, vector<8x1xf32>,
    %c0_i32_24 = arith.constant 0 : i32
    %44 = arith.cmpi eq, %arg1, %c0_i32_24 : i32
    %45 = arith.extui %44 : i1 to i32
    %c0_i32_25 = arith.constant 0 : i32
    %46 = arith.cmpi ne, %45, %c0_i32_25 : i32
    scf.if %46 {
      %47 = arith.mulf %3, %3 : vector<8x32xf32>
      %cst_26 = arith.constant dense<0.000000e+00> : vector<8xf32>
      %48 = vector.multi_reduction <add>, %47, %cst_26 [1] : vector<8x32xf32> to vector<8xf32>
      %49 = vector.shape_cast %48 : vector<8xf32> to vector<8x1xf32>
      %c0_27 = arith.constant 0 : index
      %c0_28 = arith.constant 0 : index
      %50 = vector.load %arg7[%c0_27, %c0_28] : memref<8x1xf32, #tpu.memory_space<vmem>>, vector<8x1xf32>
      %51 = arith.addf %50, %49 : vector<8x1xf32>
      %cst_29 = arith.constant 9.99999996E-13 : f32
      %52 = vector.broadcast %cst_29 : f32 to vector<8x1xf32>
      %53 = arith.maximumf %51, %52 : vector<8x1xf32>
      %54 = math.sqrt %53 : vector<8x1xf32>
      %c0_30 = arith.constant 0 : index
      %c0_31 = arith.constant 0 : index
      %55 = vector.load %arg8[%c0_30, %c0_31] : memref<8x1xf32, #tpu.memory_space<vmem>>, vector<8x1xf32>
      %56 = arith.addf %55, %49 : vector<8x1xf32>
      %cst_32 = arith.constant 9.99999996E-13 : f32
      %57 = vector.broadcast %cst_32 : f32 to vector<8x1xf32>
      %58 = arith.maximumf %56, %57 : vector<8x1xf32>
      %59 = math.sqrt %58 : vector<8x1xf32>
      %60 = arith.subf %54, %59 : vector<8x1xf32>
      %cst_33 = arith.constant 3.000000e-01 : f32
      %61 = vector.broadcast %cst_33 : f32 to vector<8x1xf32>
      %62 = arith.addf %60, %61 : vector<8x1xf32>
      %cst_34 = arith.constant 0.000000e+00 : f32
      %63 = vector.broadcast %cst_34 : f32 to vector<8x1xf32>
      %64 = arith.maximumf %62, %63 : vector<8x1xf32>
      %c0_35 = arith.constant 0 : index
      %c0_36 = arith.constant 0 : index
      %65 = vector.load %arg6[%c0_35, %c0_36] : memref<8x1xf32, #tpu.memory_space<vmem>>, vector<8x1xf32>
      tpu.vector_store %arg6[%c0_35, %c0_36], %64 {strides = array<i32>} : memref<8x1xf32, #tpu.memory_space<vmem>>, vector<8x1xf32>,
    } else {
    }
    return
  }
  func.func @transform_0(%arg0: i32, %arg1: i32) -> (i32, i32) {
    %c0_i32 = arith.constant 0 : i32
    %c0_i32_0 = arith.constant 0 : i32
    return %arg0, %c0_i32 : i32, i32
  }
  func.func @transform_1(%arg0: i32, %arg1: i32) -> (i32, i32) {
    %c0_i32 = arith.constant 0 : i32
    %c0_i32_0 = arith.constant 0 : i32
    return %arg1, %c0_i32 : i32, i32
  }
  func.func @transform_2(%arg0: i32, %arg1: i32) -> (i32, i32) {
    %c0_i32 = arith.constant 0 : i32
    %c0_i32_0 = arith.constant 0 : i32
    return %arg0, %c0_i32 : i32, i32
  }
  func.func @transform_3(%arg0: i32, %arg1: i32) -> (i32, i32) {
    %c0_i32 = arith.constant 0 : i32
    %c0_i32_0 = arith.constant 0 : i32
    return %c0_i32, %arg1 : i32, i32
  }
  func.func @transform_4(%arg0: i32, %arg1: i32) -> (i32, i32) {
    %c0_i32 = arith.constant 0 : i32
    %c0_i32_0 = arith.constant 0 : i32
    return %arg0, %c0_i32 : i32, i32
  }
}

</mosaic_0001>

<bundles_post_ra>
// kernel: tpu_custom_call.1
= control target key start
LH: loop header
LB: loop body
LE: loop exit
PB: predicated region body
PF: predicated region fallthrough
CT: control target
= control target key end

     0   :  { %9 = vsyncpa [#allocation5], 0  ;;  %s225_s18 = smov [#allocation4]   ;;  %s279_s0 = inlined_call_operand.vmem [shape: f32[8,32], index: 0, kind: input, shape index: {}]   ;;  %s280_s1 = inlined_call_operand.hbm [shape: f32[8,32], index: 1, kind: input, shape index: {}]   ;;  %s281_s2 = inlined_call_operand.vmem [shape: s32[8,1], index: 2, kind: input, shape index: {}]   ;;  %s282_s3 = inlined_call_operand.vmem [shape: s32[1,8], index: 3, kind: input, shape index: {}]   ;;  %s283_s4 = inlined_call_operand.vmem [shape: f32[8,1], index: 4, kind: output, shape index: {}]  }
   0x1   :  { %s17_s17 = sshll.u32 %s280_s1, 4  ;;  %s19_s19 = sshll.u32 %s225_s18, 4  ;;  %s18_s17 = int_to_ptr.hbm [resolvable:$true] %s17_s17  ;;  %s20_s19 = int_to_ptr.vmem [resolvable:$true] %s19_s19 }
   0x2   :  { %22 = dma.hbm_to_vmem [thread:$0]  %s18_s17, 128, %s20_s19, [#allocation5]  }
   0x3   :  { %223 = dma.done.wait [#allocation5], 128  }
   0x4   :  { %224 = vsyncadd [#allocation5], 4294967168  ;;  %v39_v0 = vld [vmem:[#allocation4] sm:$0xff]  ;;  %vm42_vm0 = vcmask 261120   ;;  %v38_v3 = vld [vmem:[%s279_s0] sm:$0xff]  ;;  %v226_v6 = vmov 0   ;;  %v113_v9 = vlaneseq }
   0x5   :  { %v41_v1 = vmul.f32 %v39_v0, %v39_v0  ;;  %185 = vmatpush.xpose.msk.msra.mxu0 %vm42_vm0, %v39_v0  ;;  %v105_v4 = vld [vmem:[%s281_s2] sm:$0xff]  ;;  %v40_v5 = vmul.f32 -2.0, %v38_v3  ;;  %193 = vset.pattern.permute.xlu0 %v226_v6  ;;  %vm35_vm1 = vcmask 7168   ;;  %v227_v8 = vmov inf  }
   0x6   :  { %37 = vst.msk [vmem:[#allocation3] sm:$0xff] %vm35_vm1, %v227_v8  ;;  %v194_v10 = vld [vmem:[%s282_s3] ss:$0 sm:$0xff]  ;;  %v114_v12 = vand.u32 127, %v113_v9  ;;  %vm228_vm4 = vmmov 1   ;;  %vm125_vm8 = vcmask 64512   ;;  %v142_v21 = vmul.f32 %v38_v3, %v38_v3 }
   0x7   :  { %v43_v2 = vsel %vm42_vm0, %v41_v1, 0.0  ;;  %v229_v23 = vmov -inf  }
   0x8   :  { %44 = vadd.xlane.f32.xlu0 %v43_v2  ;;  %186 = vmatmul.msk.f32.vlgmr.msra.gmra.mxu0 %vm42_vm0, %v40_v5  ;;  %vm117_vm3 = vcmp.lt.s32.totalorder %v114_v12, 8  ;;  %v143_v22 = vsel %vm42_vm0, %v142_v21, 0.0  ;;  %36 = vst.msk [vmem:[#allocation2] sm:$0xff] %vm35_vm1, %v229_v23 }
   0xd   :  { %v132_v24 = vld [vmem:[#allocation3] sm:$0xff] }
   0xf   :  { %v123_v25 = vld [vmem:[#allocation2] sm:$0xff] }
  0x1c   :  { %108 = vperm.xlu0 %193, %v105_v4  }
  0x7b   :  { %v45_v7 = vpop.xlane.xlu0 %44 }
  0x7c   :  { %46 = vxpose.xlu1.b32.start.end [1/1] (short) (narrow) %v45_v7, 8 }
  0x85   :  { %v102_v14 = vpop.f32.mrf.mxu0 }
  0x8e   :  { %v109_v11 = vpop.permute.xlu0 %108 }
  0x8f   :  { %vm111_vm2 = vcmp.eq.s32.totalorder %v109_v11, %v194_v10 }
  0x90   :  { %vm121_vm5 = vmxor %vm111_vm2, %vm228_vm4 }
  0x91   :  { %vm120_vm6 = vmand %vm111_vm2, %vm117_vm3 }
  0x92   :  { %vm122_vm7 = vmand %vm121_vm5, %vm117_vm3 }
 0x120   :  { %v62_v13 = vpop.trf.xlu1 }
 0x121   :  { %v78_v15 = vperm.slane %v62_v13, 0 }
 0x123   :  { %v103_v16 = vadd.f32 %v102_v14, %v78_v15 }
 0x125   :  { %v133_v17 = vsel %vm122_vm7, %v103_v16, inf  ;;  %v124_v18 = vsel %vm120_vm6, %v103_v16, -inf }
 0x126   :  { %v134_v19 = vsel %vm125_vm8, %v133_v17, inf  ;;  %v126_v20 = vsel %vm125_vm8, %v124_v18, -inf }
 0x127   :  { %135 = vmin.xlane.f32.xlu2 %v134_v19  ;;  %127 = vmax.xlane.f32.xlu1 %v126_v20 }
 0x12f   :  { %144 = vadd.xlane.f32.xlu2 %v143_v22 }
 0x19a   :  { %v136_v26 = vpop.xlane.xlu2 %135  ;;  %v128_v27 = vpop.xlane.xlu1 %127 }
 0x19b   :  { %v137_v28 = vmin.f32 %v132_v24, %v136_v26  ;;  %v129_v29 = vmax.f32 %v123_v25, %v128_v27 }
 0x19d   :  { %138 = vst.msk [vmem:[#allocation3] sm:$0xff] %vm35_vm1, %v137_v28 }
 0x19e   :  { %131 = vst.msk [vmem:[#allocation2] sm:$0xff] %vm35_vm1, %v129_v29 }
 0x1a2   :  { %v145_v30 = vpop.xlane.xlu2 %144 }
 0x1a4   :  { %v161_v31 = vld [vmem:[#allocation3] sm:$0xff] }
 0x1a5   :  { %v146_v32 = vld [vmem:[#allocation2] sm:$0xff]  ;;  %v162_v33 = vadd.f32 %v161_v31, %v145_v30 }
 0x1a6   :  { %v147_v34 = vadd.f32 %v146_v32, %v145_v30 }
 0x1a7   :  { %v163_v35 = vmax.f32 %v162_v33, 1e-12 }
 0x1a8   :  { %v148_v36 = vmax.f32 %v147_v34, 1e-12 }
 0x1a9   :  { %195 = vrsqrt.f32 %v163_v35  ;;  %vm171_vm9 = vcmp.eq.f32.partialorder %v163_v35, inf  ;;  %v174_v51 = vand.u32 2147483648, %v163_v35  ;;  %vm173_vm11 = vcmp.eq.f32.partialorder %v163_v35, 0.0 }
 0x1aa   :  { %197 = vrsqrt.f32 %v148_v36  ;;  %vm156_vm10 = vcmp.eq.f32.partialorder %v148_v36, inf  ;;  %v159_v52 = vand.u32 2147483648, %v148_v36  ;;  %vm158_vm12 = vcmp.eq.f32.partialorder %v148_v36, 0.0 }
 0x1af   :  { %v196_v37 = vpop.eup %195 }
 0x1b0   :  { %v198_v38 = vpop.eup %197  ;;  %v165_v39 = vmul.f32 %v196_v37, %v163_v35 }
 0x1b1   :  { %v150_v40 = vmul.f32 %v198_v38, %v148_v36 }
 0x1b2   :  { %v166_v41 = vmul.f32 %v196_v37, %v165_v39 }
 0x1b3   :  { %v151_v42 = vmul.f32 %v198_v38, %v150_v40 }
 0x1b4   :  { %v167_v43 = vmul.f32 0.5, %v166_v41 }
 0x1b5   :  { %v152_v44 = vmul.f32 0.5, %v151_v42 }
 0x1b6   :  { %v168_v45 = vsub.f32 1.5, %v167_v43 }
 0x1b7   :  { %v153_v46 = vsub.f32 1.5, %v152_v44 }
 0x1b8   :  { %v169_v47 = vmul.f32 %v196_v37, %v168_v45 }
 0x1b9   :  { %v154_v48 = vmul.f32 %v198_v38, %v153_v46 }
 0x1ba   :  { %v170_v49 = vmul.f32 %v169_v47, %v163_v35 }
 0x1bb   :  { %v155_v50 = vmul.f32 %v154_v48, %v148_v36 }
 0x1bc   :  { %v172_v53 = vsel %vm171_vm9, %v163_v35, %v170_v49 }
 0x1bd   :  { %v157_v54 = vsel %vm156_vm10, %v148_v36, %v155_v50  ;;  %v175_v55 = vsel %vm173_vm11, %v174_v51, %v172_v53 }
 0x1be   :  { %v160_v56 = vsel %vm158_vm12, %v159_v52, %v157_v54 }
 0x1bf   :  { %v176_v57 = vsub.f32 %v160_v56, %v175_v55 }
 0x1c1   :  { %v177_v58 = vadd.f32 0.3, %v176_v57 }
 0x1c3   :  { %v178_v59 = vmax.f32 %v177_v58, 0.0 }
 0x1c5   :  { %179 = vst.msk [vmem:[%s283_s4] sm:$0xff] %vm35_vm1, %v178_v59 }
 0x1c6   :  { %184 = vsyncpa [#allocation5], 1 }

</bundles_post_ra>
